<compile_context>
chip_gen: v7x
topology: tpu7x:2x2x1
jax: 0.10.0
libtpu: 0.0.40
codegen_flags: <defaults>
</compile_context>

<pallas_src>
import functools

import jax
import jax.numpy as jnp
from jax.experimental import pallas as pl
from jax.experimental.pallas import tpu as pltpu

LANE = 128  # TPU lane width


def _round_up(n, m):
    return ((n + m - 1) // m) * m


# ----------------------------------------------------------------------------
# Fused MLP autoencoder kernel: all linear layers (matmul + bias + LeakyReLU)
# execute inside one pallas_call per batch tile.  Weights are (in, out) so the
# kernel does h @ W + b, matching PyTorch's x @ W.T + b.
# ----------------------------------------------------------------------------
def _make_autoencoder_kernel(n_layers, act_flags, latent_layer_idx):
    """act_flags[i]      : apply LeakyReLU(0.2) after layer i
       latent_layer_idx  : index of the encoder output layer (its result is the
                           `latent` output of the autoencoder)."""

    def kernel(*refs):
        # refs = [x, w0, b0, ..., w_{L-1}, b_{L-1}, recon_out, latent_out]
        x_ref = refs[0]
        wb_refs = refs[1 : 1 + 2 * n_layers]
        recon_ref = refs[1 + 2 * n_layers]
        latent_ref = refs[2 + 2 * n_layers]

        h = x_ref[...]  # bf16 tile (TB, F0_padded)
        for i in range(n_layers):
            w = wb_refs[2 * i][...]       # bf16 (fin_p, fout_p) — VMEM resident
            b = wb_refs[2 * i + 1][...]   # f32  (1, fout_p)
            # MXU matmul in bf16, accumulate in f32.
            acc = jnp.dot(h, w, preferred_element_type=jnp.float32) + b
            if act_flags[i]:
                acc = jnp.where(acc > 0, acc, 0.2 * acc)  # LeakyReLU(0.2), f32
            if i == latent_layer_idx:
                latent_ref[...] = acc.astype(latent_ref.dtype)
            if i == n_layers - 1:
                recon_ref[...] = acc.astype(recon_ref.dtype)
            else:
                h = acc.astype(jnp.bfloat16)  # bf16 operand for next matmul

    return kernel


def autoencoder_forward(x_nchw, params, *, im_size, n_latent):
    """params: list of (W, b) with W of shape (in, out), b of shape (1, out),
    ordered encoder.l1, encoder.hidden*, encoder.out, decoder.l1,
    decoder.hidden*, decoder.out (non-tapered AutoEncoder)."""
    B = x_nchw.shape[0]
    x_flat = x_nchw.reshape(B, -1).astype(jnp.float32)  # Encoder's x.view(B, -1)

    n_layers = len(params)
    n_enc = n_layers // 2  # encoder and decoder have the same depth
    # LeakyReLU after every layer except encoder.out and decoder.out
    act_flags = tuple(
        not (i == n_enc - 1 or i == n_layers - 1) for i in range(n_layers)
    )
    latent_idx = n_enc - 1

    # ---- padded (lane-dense) feature dims -----------------------------------
    dims_in = [w.shape[0] for w, _ in params]
    dims_out = [w.shape[1] for w, _ in params]
    dims_in_p = [_round_up(d, LANE) for d in dims_in]
    dims_out_p = [_round_up(d, LANE) for d in dims_out]
    in0_p = dims_in_p[0]                 # padded im_size (kernel input)
    recon_p = dims_out_p[-1]             # padded im_size (kernel output)
    latent_p = dims_out_p[latent_idx]    # padded n_latent

    # ---- batch tiling --------------------------------------------------------
    # MXU-friendly tile: multiple of 16 (bf16 sublane packing), up to 128.
    TB = 128 if B >= 128 else _round_up(max(B, 1), 16)
    num_tiles = pl.cdiv(B, TB)
    B_pad = num_tiles * TB
    grid = (num_tiles,)

    # ---- pad inputs / params (zero padding is mathematically inert) ---------
    x_p = jnp.zeros((B_pad, in0_p), jnp.bfloat16)
    x_p = x_p.at[:B, :im_size].set(x_flat.astype(jnp.bfloat16))

    flat_params = []
    param_specs = []
    for li, (w, b) in enumerate(params):
        fin, fout = w.shape
        fin_p, fout_p = dims_in_p[li], dims_out_p[li]
        w_p = jnp.zeros((fin_p, fout_p), jnp.bfloat16)
        w_p = w_p.at[:fin, :fout].set(w.astype(jnp.bfloat16))
        b_p = jnp.zeros((1, fout_p), jnp.float32)
        b_p = b_p.at[:, :fout].set(b.reshape(1, fout).astype(jnp.float32))
        flat_params.append(w_p)
        flat_params.append(b_p)
        # Constant index_map -> weights/biases are loaded once and stay
        # resident in VMEM across the (pipelined) batch grid.
        param_specs.append(pl.BlockSpec((fin_p, fout_p), lambda i: (0, 0)))
        param_specs.append(pl.BlockSpec((1, fout_p), lambda i: (0, 0)))

    in_specs = [pl.BlockSpec((TB, in0_p), lambda i: (i, 0))] + param_specs
    out_specs = (
        pl.BlockSpec((TB, recon_p), lambda i: (i, 0)),
        pl.BlockSpec((TB, latent_p), lambda i: (i, 0)),
    )

    # ---- cost estimate & VMEM budget ----------------------------------------
    flops = 2 * B_pad * sum(fi * fo for fi, fo in zip(dims_in_p, dims_out_p))
    weight_bytes = sum(
        fi * fo * 2 + fo * 4 for fi, fo in zip(dims_in_p, dims_out_p)
    )
    io_bytes = B_pad * (in0_p * 2 + recon_p * 4 + latent_p * 4)
    cost = pl.CostEstimate(
        flops=flops, transcendentals=0, bytes_accessed=weight_bytes + io_bytes
    )

    tile_bytes = TB * (in0_p * 2 + recon_p * 4 + latent_p * 4)
    # resident weights (+headroom for double-buffered copies) + 2x double-
    # buffered activation tiles + 4 MiB slack; keep within v7x's 64 MiB VMEM.
    vmem_needed = 2 * weight_bytes + 4 * tile_bytes + (4 << 20)
    vmem_limit = int(min(max(vmem_needed, 32 << 20), 64 << 20))

    kernel = _make_autoencoder_kernel(n_layers, act_flags, latent_idx)

    recon_pad, latent_pad = pl.pallas_call(
        kernel,
        out_shape=(
            jax.ShapeDtypeStruct((B_pad, recon_p), jnp.float32),
            jax.ShapeDtypeStruct((B_pad, latent_p), jnp.float32),
        ),
        grid=grid,
        in_specs=in_specs,
        out_specs=out_specs,
        compiler_params=pltpu.CompilerParams(
            dimension_semantics=("parallel",),
            vmem_limit_bytes=vmem_limit,
        ),
        cost_estimate=cost,
    )(x_p, *flat_params)

    # Slice away batch / feature padding.
    recon = recon_pad[:B, :im_size]
    latent = latent_pad[:B, :n_latent]

    # Decoder.forward with square=True: reshape to (B, 1, sqrt, sqrt)
    side = int(round(im_size ** 0.5))
    return recon.reshape(B, 1, side, side), latent


# ----------------------------------------------------------------------------
# Deterministic parameter construction (PyTorch nn.Linear-style uniform init).
# ----------------------------------------------------------------------------
def _linear_params(key, fan_in, fan_out):
    kw, kb = jax.random.split(key)
    bound = 1.0 / (fan_in ** 0.5)
    w = jax.random.uniform(kw, (fan_in, fan_out), jnp.float32, -bound, bound)
    b = jax.random.uniform(kb, (1, fan_out), jnp.float32, -bound, bound)
    return w, b


def make_autoencoder_params(key, im_size, n_latent, n_hidden, NN_width):
    """Non-tapered AutoEncoder(im_size, n_latent, n_hidden, NN_width)."""
    dims = []
    # Encoder: im_size -> NN_width -> [NN_width]*n_hidden -> n_latent
    dims.append((im_size, NN_width))
    for _ in range(n_hidden):
        dims.append((NN_width, NN_width))
    dims.append((NN_width, n_latent))
    # Decoder: n_latent -> NN_width -> [NN_width]*n_hidden -> im_size
    dims.append((n_latent, NN_width))
    for _ in range(n_hidden):
        dims.append((NN_width, NN_width))
    dims.append((NN_width, im_size))

    params = []
    for fi, fo in dims:
        key, sub = jax.random.split(key)
        params.append(_linear_params(sub, fi, fo))
    return params


# ----------------------------------------------------------------------------
# Pure-JAX reference (mirrors the PyTorch forward).  matmul_dtype=bfloat16
# reproduces the kernel's mixed-precision scheme exactly (bf16 operands, f32
# accumulation, f32 bias+activation); float32 gives the exact PyTorch math.
# ----------------------------------------------------------------------------
def reference_forward(x_nchw, params, *, im_size, n_latent,
                      matmul_dtype=jnp.float32):
    B = x_nchw.shape[0]
    h = x_nchw.reshape(B, -1).astype(jnp.float32)
    n_layers = len(params)
    n_enc = n_layers // 2
    latent = None
    for i, (w, b) in enumerate(params):
        h = jnp.dot(
            h.astype(matmul_dtype),
            w.astype(matmul_dtype),
            preferred_element_type=jnp.float32,
        ) + b.reshape(1, -1).astype(jnp.float32)
        if not (i == n_enc - 1 or i == n_layers - 1):
            h = jnp.where(h > 0, h, 0.2 * h)
        if i == n_enc - 1:
            latent = h
    side = int(round(im_size ** 0.5))
    return h.reshape(B, 1, side, side), latent


if __name__ == "__main__":
    # Small shapes consistent with the module: 16x16 single-channel images.
    B = 2
    side = 16
    im_size = side * side      # 256
    n_latent = 8
    n_hidden = 2
    NN_width = 32

    key = jax.random.PRNGKey(0)
    kx, kp = jax.random.split(key)
    x = jax.random.normal(kx, (B, 1, side, side), jnp.float32)
    params = make_autoencoder_params(kp, im_size, n_latent, n_hidden, NN_width)

    fwd = jax.jit(
        functools.partial(autoencoder_forward, im_size=im_size, n_latent=n_latent)
    )
    recon, latent = fwd(x, params)
    jax.block_until_ready((recon, latent))

    assert recon.shape == (B, 1, side, side)
    assert latent.shape == (B, n_latent)

    # Tight check against a reference using the same bf16/f32 mixed precision.
    ref_recon_bf, ref_latent_bf = reference_forward(
        x, params, im_size=im_size, n_latent=n_latent, matmul_dtype=jnp.bfloat16
    )
    assert jnp.allclose(recon, ref_recon_bf, atol=2e-3, rtol=2e-3)
    assert jnp.allclose(latent, ref_latent_bf, atol=2e-3, rtol=2e-3)

    # Loose check against the exact f32 PyTorch-equivalent math (bf16 weight
    # rounding across 8 layers stays well inside this band).
    ref_recon_f32, ref_latent_f32 = reference_forward(
        x, params, im_size=im_size, n_latent=n_latent, matmul_dtype=jnp.float32
    )
    assert jnp.allclose(recon, ref_recon_f32, atol=1e-1, rtol=1e-1)
    assert jnp.allclose(latent, ref_latent_f32, atol=1e-1, rtol=1e-1)

    print("KERNEL_OK")
</pallas_src>

<mosaic_0001>
module attributes {stable_mosaic.version = 11 : i64} {
  func.func @kernel(%arg0: i32, %arg1: memref<16x256xbf16, #tpu.memory_space<vmem>>, %arg2: memref<256x128xbf16, #tpu.memory_space<vmem>>, %arg3: memref<1x128xf32, #tpu.memory_space<vmem>>, %arg4: memref<128x128xbf16, #tpu.memory_space<vmem>>, %arg5: memref<1x128xf32, #tpu.memory_space<vmem>>, %arg6: memref<128x128xbf16, #tpu.memory_space<vmem>>, %arg7: memref<1x128xf32, #tpu.memory_space<vmem>>, %arg8: memref<128x128xbf16, #tpu.memory_space<vmem>>, %arg9: memref<1x128xf32, #tpu.memory_space<vmem>>, %arg10: memref<128x128xbf16, #tpu.memory_space<vmem>>, %arg11: memref<1x128xf32, #tpu.memory_space<vmem>>, %arg12: memref<128x128xbf16, #tpu.memory_space<vmem>>, %arg13: memref<1x128xf32, #tpu.memory_space<vmem>>, %arg14: memref<128x128xbf16, #tpu.memory_space<vmem>>, %arg15: memref<1x128xf32, #tpu.memory_space<vmem>>, %arg16: memref<128x256xbf16, #tpu.memory_space<vmem>>, %arg17: memref<1x256xf32, #tpu.memory_space<vmem>>, %arg18: memref<16x256xf32, #tpu.memory_space<vmem>>, %arg19: memref<16x128xf32, #tpu.memory_space<vmem>>) attributes {dimension_semantics = [#tpu.dimension_semantics<parallel>], iteration_bounds = array<i64: 1>, scalar_prefetch = 0 : i64, scratch_operands = 0 : i64, tpu.core_type = #tpu.core_type<tc>, window_params = [{transform_indices = @transform_0, window_bounds = array<i64: 16, 256>}, {pipeline_mode = #tpu.pipeline_mode<synchronous>, transform_indices = @transform_1, window_bounds = array<i64: 256, 128>}, {pipeline_mode = #tpu.pipeline_mode<synchronous>, transform_indices = @transform_2, window_bounds = array<i64: 1, 128>}, {pipeline_mode = #tpu.pipeline_mode<synchronous>, transform_indices = @transform_3, window_bounds = array<i64: 128, 128>}, {pipeline_mode = #tpu.pipeline_mode<synchronous>, transform_indices = @transform_4, window_bounds = array<i64: 1, 128>}, {pipeline_mode = #tpu.pipeline_mode<synchronous>, transform_indices = @transform_5, window_bounds = array<i64: 128, 128>}, {pipeline_mode = #tpu.pipeline_mode<synchronous>, transform_indices = @transform_6, window_bounds = array<i64: 1, 128>}, {pipeline_mode = #tpu.pipeline_mode<synchronous>, transform_indices = @transform_7, window_bounds = array<i64: 128, 128>}, {pipeline_mode = #tpu.pipeline_mode<synchronous>, transform_indices = @transform_8, window_bounds = array<i64: 1, 128>}, {pipeline_mode = #tpu.pipeline_mode<synchronous>, transform_indices = @transform_9, window_bounds = array<i64: 128, 128>}, {pipeline_mode = #tpu.pipeline_mode<synchronous>, transform_indices = @transform_10, window_bounds = array<i64: 1, 128>}, {pipeline_mode = #tpu.pipeline_mode<synchronous>, transform_indices = @transform_11, window_bounds = array<i64: 128, 128>}, {pipeline_mode = #tpu.pipeline_mode<synchronous>, transform_indices = @transform_12, window_bounds = array<i64: 1, 128>}, {pipeline_mode = #tpu.pipeline_mode<synchronous>, transform_indices = @transform_13, window_bounds = array<i64: 128, 128>}, {pipeline_mode = #tpu.pipeline_mode<synchronous>, transform_indices = @transform_14, window_bounds = array<i64: 1, 128>}, {pipeline_mode = #tpu.pipeline_mode<synchronous>, transform_indices = @transform_15, window_bounds = array<i64: 128, 256>}, {pipeline_mode = #tpu.pipeline_mode<synchronous>, transform_indices = @transform_16, window_bounds = array<i64: 1, 256>}, {transform_indices = @transform_17, window_bounds = array<i64: 16, 256>}, {transform_indices = @transform_18, window_bounds = array<i64: 16, 128>}]} {
    %c0 = arith.constant 0 : index
    %c0_0 = arith.constant 0 : index
    %0 = vector.load %arg1[%c0, %c0_0] : memref<16x256xbf16, #tpu.memory_space<vmem>>, vector<16x256xbf16>
    %c0_1 = arith.constant 0 : index
    %c0_2 = arith.constant 0 : index
    %1 = vector.load %arg2[%c0_1, %c0_2] : memref<256x128xbf16, #tpu.memory_space<vmem>>, vector<256x128xbf16>
    %c0_3 = arith.constant 0 : index
    %c0_4 = arith.constant 0 : index
    %2 = vector.load %arg3[%c0_3, %c0_4] : memref<1x128xf32, #tpu.memory_space<vmem>>, vector<1x128xf32>
    %cst = arith.constant dense<0.000000e+00> : vector<16x128xf32>
    %3 = tpu.matmul %0, %1, %cst {dimension_numbers = #tpu.dot_dimension_numbers<[1], [0], [0], [1], [0, 0, 1, 1], [], []>} : vector<16x256xbf16>, vector<256x128xbf16>, vector<16x128xf32> -> vector<16x128xf32>
    %4 = vector.broadcast %2 : vector<1x128xf32> to vector<16x128xf32>
    %5 = arith.addf %3, %4 : vector<16x128xf32>
    %cst_5 = arith.constant 0.000000e+00 : f32
    %6 = vector.broadcast %cst_5 : f32 to vector<16x128xf32>
    %7 = arith.cmpf ogt, %5, %6 : vector<16x128xf32>
    %cst_6 = arith.constant 2.000000e-01 : f32
    %8 = vector.broadcast %cst_6 : f32 to vector<16x128xf32>
    %9 = arith.mulf %8, %5 : vector<16x128xf32>
    %10 = arith.select %7, %5, %9 : vector<16x128xi1>, vector<16x128xf32>
    %11 = arith.truncf %10 : vector<16x128xf32> to vector<16x128xbf16>
    %c0_7 = arith.constant 0 : index
    %c0_8 = arith.constant 0 : index
    %12 = vector.load %arg4[%c0_7, %c0_8] : memref<128x128xbf16, #tpu.memory_space<vmem>>, vector<128x128xbf16>
    %c0_9 = arith.constant 0 : index
    %c0_10 = arith.constant 0 : index
    %13 = vector.load %arg5[%c0_9, %c0_10] : memref<1x128xf32, #tpu.memory_space<vmem>>, vector<1x128xf32>
    %cst_11 = arith.constant dense<0.000000e+00> : vector<16x128xf32>
    %14 = tpu.matmul %11, %12, %cst_11 {dimension_numbers = #tpu.dot_dimension_numbers<[1], [0], [0], [1], [0, 0, 1, 1], [], []>} : vector<16x128xbf16>, vector<128x128xbf16>, vector<16x128xf32> -> vector<16x128xf32>
    %15 = vector.broadcast %13 : vector<1x128xf32> to vector<16x128xf32>
    %16 = arith.addf %14, %15 : vector<16x128xf32>
    %cst_12 = arith.constant 0.000000e+00 : f32
    %17 = vector.broadcast %cst_12 : f32 to vector<16x128xf32>
    %18 = arith.cmpf ogt, %16, %17 : vector<16x128xf32>
    %cst_13 = arith.constant 2.000000e-01 : f32
    %19 = vector.broadcast %cst_13 : f32 to vector<16x128xf32>
    %20 = arith.mulf %19, %16 : vector<16x128xf32>
    %21 = arith.select %18, %16, %20 : vector<16x128xi1>, vector<16x128xf32>
    %22 = arith.truncf %21 : vector<16x128xf32> to vector<16x128xbf16>
    %c0_14 = arith.constant 0 : index
    %c0_15 = arith.constant 0 : index
    %23 = vector.load %arg6[%c0_14, %c0_15] : memref<128x128xbf16, #tpu.memory_space<vmem>>, vector<128x128xbf16>
    %c0_16 = arith.constant 0 : index
    %c0_17 = arith.constant 0 : index
    %24 = vector.load %arg7[%c0_16, %c0_17] : memref<1x128xf32, #tpu.memory_space<vmem>>, vector<1x128xf32>
    %cst_18 = arith.constant dense<0.000000e+00> : vector<16x128xf32>
    %25 = tpu.matmul %22, %23, %cst_18 {dimension_numbers = #tpu.dot_dimension_numbers<[1], [0], [0], [1], [0, 0, 1, 1], [], []>} : vector<16x128xbf16>, vector<128x128xbf16>, vector<16x128xf32> -> vector<16x128xf32>
    %26 = vector.broadcast %24 : vector<1x128xf32> to vector<16x128xf32>
    %27 = arith.addf %25, %26 : vector<16x128xf32>
    %cst_19 = arith.constant 0.000000e+00 : f32
    %28 = vector.broadcast %cst_19 : f32 to vector<16x128xf32>
    %29 = arith.cmpf ogt, %27, %28 : vector<16x128xf32>
    %cst_20 = arith.constant 2.000000e-01 : f32
    %30 = vector.broadcast %cst_20 : f32 to vector<16x128xf32>
    %31 = arith.mulf %30, %27 : vector<16x128xf32>
    %32 = arith.select %29, %27, %31 : vector<16x128xi1>, vector<16x128xf32>
    %33 = arith.truncf %32 : vector<16x128xf32> to vector<16x128xbf16>
    %c0_21 = arith.constant 0 : index
    %c0_22 = arith.constant 0 : index
    %34 = vector.load %arg8[%c0_21, %c0_22] : memref<128x128xbf16, #tpu.memory_space<vmem>>, vector<128x128xbf16>
    %c0_23 = arith.constant 0 : index
    %c0_24 = arith.constant 0 : index
    %35 = vector.load %arg9[%c0_23, %c0_24] : memref<1x128xf32, #tpu.memory_space<vmem>>, vector<1x128xf32>
    %cst_25 = arith.constant dense<0.000000e+00> : vector<16x128xf32>
    %36 = tpu.matmul %33, %34, %cst_25 {dimension_numbers = #tpu.dot_dimension_numbers<[1], [0], [0], [1], [0, 0, 1, 1], [], []>} : vector<16x128xbf16>, vector<128x128xbf16>, vector<16x128xf32> -> vector<16x128xf32>
    %37 = vector.broadcast %35 : vector<1x128xf32> to vector<16x128xf32>
    %38 = arith.addf %36, %37 : vector<16x128xf32>
    %c0_26 = arith.constant 0 : index
    %c0_27 = arith.constant 0 : index
    %39 = vector.load %arg19[%c0_26, %c0_27] : memref<16x128xf32, #tpu.memory_space<vmem>>, vector<16x128xf32>
    tpu.vector_store %arg19[%c0_26, %c0_27], %38 {strides = array<i32>} : memref<16x128xf32, #tpu.memory_space<vmem>>, vector<16x128xf32>,
    %40 = arith.truncf %38 : vector<16x128xf32> to vector<16x128xbf16>
    %c0_28 = arith.constant 0 : index
    %c0_29 = arith.constant 0 : index
    %41 = vector.load %arg10[%c0_28, %c0_29] : memref<128x128xbf16, #tpu.memory_space<vmem>>, vector<128x128xbf16>
    %c0_30 = arith.constant 0 : index
    %c0_31 = arith.constant 0 : index
    %42 = vector.load %arg11[%c0_30, %c0_31] : memref<1x128xf32, #tpu.memory_space<vmem>>, vector<1x128xf32>
    %cst_32 = arith.constant dense<0.000000e+00> : vector<16x128xf32>
    %43 = tpu.matmul %40, %41, %cst_32 {dimension_numbers = #tpu.dot_dimension_numbers<[1], [0], [0], [1], [0, 0, 1, 1], [], []>} : vector<16x128xbf16>, vector<128x128xbf16>, vector<16x128xf32> -> vector<16x128xf32>
    %44 = vector.broadcast %42 : vector<1x128xf32> to vector<16x128xf32>
    %45 = arith.addf %43, %44 : vector<16x128xf32>
    %cst_33 = arith.constant 0.000000e+00 : f32
    %46 = vector.broadcast %cst_33 : f32 to vector<16x128xf32>
    %47 = arith.cmpf ogt, %45, %46 : vector<16x128xf32>
    %cst_34 = arith.constant 2.000000e-01 : f32
    %48 = vector.broadcast %cst_34 : f32 to vector<16x128xf32>
    %49 = arith.mulf %48, %45 : vector<16x128xf32>
    %50 = arith.select %47, %45, %49 : vector<16x128xi1>, vector<16x128xf32>
    %51 = arith.truncf %50 : vector<16x128xf32> to vector<16x128xbf16>
    %c0_35 = arith.constant 0 : index
    %c0_36 = arith.constant 0 : index
    %52 = vector.load %arg12[%c0_35, %c0_36] : memref<128x128xbf16, #tpu.memory_space<vmem>>, vector<128x128xbf16>
    %c0_37 = arith.constant 0 : index
    %c0_38 = arith.constant 0 : index
    %53 = vector.load %arg13[%c0_37, %c0_38] : memref<1x128xf32, #tpu.memory_space<vmem>>, vector<1x128xf32>
    %cst_39 = arith.constant dense<0.000000e+00> : vector<16x128xf32>
    %54 = tpu.matmul %51, %52, %cst_39 {dimension_numbers = #tpu.dot_dimension_numbers<[1], [0], [0], [1], [0, 0, 1, 1], [], []>} : vector<16x128xbf16>, vector<128x128xbf16>, vector<16x128xf32> -> vector<16x128xf32>
    %55 = vector.broadcast %53 : vector<1x128xf32> to vector<16x128xf32>
    %56 = arith.addf %54, %55 : vector<16x128xf32>
    %cst_40 = arith.constant 0.000000e+00 : f32
    %57 = vector.broadcast %cst_40 : f32 to vector<16x128xf32>
    %58 = arith.cmpf ogt, %56, %57 : vector<16x128xf32>
    %cst_41 = arith.constant 2.000000e-01 : f32
    %59 = vector.broadcast %cst_41 : f32 to vector<16x128xf32>
    %60 = arith.mulf %59, %56 : vector<16x128xf32>
    %61 = arith.select %58, %56, %60 : vector<16x128xi1>, vector<16x128xf32>
    %62 = arith.truncf %61 : vector<16x128xf32> to vector<16x128xbf16>
    %c0_42 = arith.constant 0 : index
    %c0_43 = arith.constant 0 : index
    %63 = vector.load %arg14[%c0_42, %c0_43] : memref<128x128xbf16, #tpu.memory_space<vmem>>, vector<128x128xbf16>
    %c0_44 = arith.constant 0 : index
    %c0_45 = arith.constant 0 : index
    %64 = vector.load %arg15[%c0_44, %c0_45] : memref<1x128xf32, #tpu.memory_space<vmem>>, vector<1x128xf32>
    %cst_46 = arith.constant dense<0.000000e+00> : vector<16x128xf32>
    %65 = tpu.matmul %62, %63, %cst_46 {dimension_numbers = #tpu.dot_dimension_numbers<[1], [0], [0], [1], [0, 0, 1, 1], [], []>} : vector<16x128xbf16>, vector<128x128xbf16>, vector<16x128xf32> -> vector<16x128xf32>
    %66 = vector.broadcast %64 : vector<1x128xf32> to vector<16x128xf32>
    %67 = arith.addf %65, %66 : vector<16x128xf32>
    %cst_47 = arith.constant 0.000000e+00 : f32
    %68 = vector.broadcast %cst_47 : f32 to vector<16x128xf32>
    %69 = arith.cmpf ogt, %67, %68 : vector<16x128xf32>
    %cst_48 = arith.constant 2.000000e-01 : f32
    %70 = vector.broadcast %cst_48 : f32 to vector<16x128xf32>
    %71 = arith.mulf %70, %67 : vector<16x128xf32>
    %72 = arith.select %69, %67, %71 : vector<16x128xi1>, vector<16x128xf32>
    %73 = arith.truncf %72 : vector<16x128xf32> to vector<16x128xbf16>
    %c0_49 = arith.constant 0 : index
    %c0_50 = arith.constant 0 : index
    %74 = vector.load %arg16[%c0_49, %c0_50] : memref<128x256xbf16, #tpu.memory_space<vmem>>, vector<128x256xbf16>
    %c0_51 = arith.constant 0 : index
    %c0_52 = arith.constant 0 : index
    %75 = vector.load %arg17[%c0_51, %c0_52] : memref<1x256xf32, #tpu.memory_space<vmem>>, vector<1x256xf32>
    %cst_53 = arith.constant dense<0.000000e+00> : vector<16x256xf32>
    %76 = tpu.matmul %73, %74, %cst_53 {dimension_numbers = #tpu.dot_dimension_numbers<[1], [0], [0], [1], [0, 0, 1, 1], [], []>} : vector<16x128xbf16>, vector<128x256xbf16>, vector<16x256xf32> -> vector<16x256xf32>
    %77 = vector.broadcast %75 : vector<1x256xf32> to vector<16x256xf32>
    %78 = arith.addf %76, %77 : vector<16x256xf32>
    %c0_54 = arith.constant 0 : index
    %c0_55 = arith.constant 0 : index
    %79 = vector.load %arg18[%c0_54, %c0_55] : memref<16x256xf32, #tpu.memory_space<vmem>>, vector<16x256xf32>
    tpu.vector_store %arg18[%c0_54, %c0_55], %78 {strides = array<i32>} : memref<16x256xf32, #tpu.memory_space<vmem>>, vector<16x256xf32>,
    return
  }
  func.func @transform_0(%arg0: i32) -> (i32, i32) {
    %c0_i32 = arith.constant 0 : i32
    %c0_i32_0 = arith.constant 0 : i32
    return %arg0, %c0_i32 : i32, i32
  }
  func.func @transform_1(%arg0: i32) -> (i32, i32) {
    %c0_i32 = arith.constant 0 : i32
    %c0_i32_0 = arith.constant 0 : i32
    %c0_i32_1 = arith.constant 0 : i32
    return %c0_i32, %c0_i32_0 : i32, i32
  }
  func.func @transform_2(%arg0: i32) -> (i32, i32) {
    %c0_i32 = arith.constant 0 : i32
    %c0_i32_0 = arith.constant 0 : i32
    %c0_i32_1 = arith.constant 0 : i32
    return %c0_i32, %c0_i32_0 : i32, i32
  }
  func.func @transform_3(%arg0: i32) -> (i32, i32) {
    %c0_i32 = arith.constant 0 : i32
    %c0_i32_0 = arith.constant 0 : i32
    %c0_i32_1 = arith.constant 0 : i32
    return %c0_i32, %c0_i32_0 : i32, i32
  }
  func.func @transform_4(%arg0: i32) -> (i32, i32) {
    %c0_i32 = arith.constant 0 : i32
    %c0_i32_0 = arith.constant 0 : i32
    %c0_i32_1 = arith.constant 0 : i32
    return %c0_i32, %c0_i32_0 : i32, i32
  }
  func.func @transform_5(%arg0: i32) -> (i32, i32) {
    %c0_i32 = arith.constant 0 : i32
    %c0_i32_0 = arith.constant 0 : i32
    %c0_i32_1 = arith.constant 0 : i32
    return %c0_i32, %c0_i32_0 : i32, i32
  }
  func.func @transform_6(%arg0: i32) -> (i32, i32) {
    %c0_i32 = arith.constant 0 : i32
    %c0_i32_0 = arith.constant 0 : i32
    %c0_i32_1 = arith.constant 0 : i32
    return %c0_i32, %c0_i32_0 : i32, i32
  }
  func.func @transform_7(%arg0: i32) -> (i32, i32) {
    %c0_i32 = arith.constant 0 : i32
    %c0_i32_0 = arith.constant 0 : i32
    %c0_i32_1 = arith.constant 0 : i32
    return %c0_i32, %c0_i32_0 : i32, i32
  }
  func.func @transform_8(%arg0: i32) -> (i32, i32) {
    %c0_i32 = arith.constant 0 : i32
    %c0_i32_0 = arith.constant 0 : i32
    %c0_i32_1 = arith.constant 0 : i32
    return %c0_i32, %c0_i32_0 : i32, i32
  }
  func.func @transform_9(%arg0: i32) -> (i32, i32) {
    %c0_i32 = arith.constant 0 : i32
    %c0_i32_0 = arith.constant 0 : i32
    %c0_i32_1 = arith.constant 0 : i32
    return %c0_i32, %c0_i32_0 : i32, i32
  }
  func.func @transform_10(%arg0: i32) -> (i32, i32) {
    %c0_i32 = arith.constant 0 : i32
    %c0_i32_0 = arith.constant 0 : i32
    %c0_i32_1 = arith.constant 0 : i32
    return %c0_i32, %c0_i32_0 : i32, i32
  }
  func.func @transform_11(%arg0: i32) -> (i32, i32) {
    %c0_i32 = arith.constant 0 : i32
    %c0_i32_0 = arith.constant 0 : i32
    %c0_i32_1 = arith.constant 0 : i32
    return %c0_i32, %c0_i32_0 : i32, i32
  }
  func.func @transform_12(%arg0: i32) -> (i32, i32) {
    %c0_i32 = arith.constant 0 : i32
    %c0_i32_0 = arith.constant 0 : i32
    %c0_i32_1 = arith.constant 0 : i32
    return %c0_i32, %c0_i32_0 : i32, i32
  }
  func.func @transform_13(%arg0: i32) -> (i32, i32) {
    %c0_i32 = arith.constant 0 : i32
    %c0_i32_0 = arith.constant 0 : i32
    %c0_i32_1 = arith.constant 0 : i32
    return %c0_i32, %c0_i32_0 : i32, i32
  }
  func.func @transform_14(%arg0: i32) -> (i32, i32) {
    %c0_i32 = arith.constant 0 : i32
    %c0_i32_0 = arith.constant 0 : i32
    %c0_i32_1 = arith.constant 0 : i32
    return %c0_i32, %c0_i32_0 : i32, i32
  }
  func.func @transform_15(%arg0: i32) -> (i32, i32) {
    %c0_i32 = arith.constant 0 : i32
    %c0_i32_0 = arith.constant 0 : i32
    %c0_i32_1 = arith.constant 0 : i32
    return %c0_i32, %c0_i32_0 : i32, i32
  }
  func.func @transform_16(%arg0: i32) -> (i32, i32) {
    %c0_i32 = arith.constant 0 : i32
    %c0_i32_0 = arith.constant 0 : i32
    %c0_i32_1 = arith.constant 0 : i32
    return %c0_i32, %c0_i32_0 : i32, i32
  }
  func.func @transform_17(%arg0: i32) -> (i32, i32) {
    %c0_i32 = arith.constant 0 : i32
    %c0_i32_0 = arith.constant 0 : i32
    return %arg0, %c0_i32 : i32, i32
  }
  func.func @transform_18(%arg0: i32) -> (i32, i32) {
    %c0_i32 = arith.constant 0 : i32
    %c0_i32_0 = arith.constant 0 : i32
    return %arg0, %c0_i32 : i32, i32
  }
}

</mosaic_0001>

<bundles_post_ra>
// kernel: autoencoder_forward.1
= control target key start
LH: loop header
LB: loop body
LE: loop exit
PB: predicated region body
PF: predicated region fallthrough
CT: control target
= control target key end

     0   :  { %v1506_v1 = vmov 0.0   ;;  %vm1507_vm0 = vmmov 0   ;;  %s1952_s1 = inlined_call_operand.vmem [shape: bf16[256,128], index: 1, kind: input, shape index: {}]   ;;  %s1953_s0 = inlined_call_operand.vmem [shape: bf16[16,256], index: 0, kind: input, shape index: {}]   ;;  %s1954_s3 = inlined_call_operand.vmem [shape: bf16[128,128], index: 3, kind: input, shape index: {}]   ;;  %s1955_s5 = inlined_call_operand.vmem [shape: bf16[128,128], index: 5, kind: input, shape index: {}]   ;;  %s1956_s2 = inlined_call_operand.vmem [shape: f32[1,128], index: 2, kind: input, shape index: {}]   ;;  %s1957_s7 = inlined_call_operand.vmem [shape: bf16[128,128], index: 7, kind: input, shape index: {}]   ;;  %s1958_s4 = inlined_call_operand.vmem [shape: f32[1,128], index: 4, kind: input, shape index: {}]   ;;  %s1959_s9 = inlined_call_operand.vmem [shape: bf16[128,128], index: 9, kind: input, shape index: {}]   ;;  %s1960_s6 = inlined_call_operand.vmem [shape: f32[1,128], index: 6, kind: input, shape index: {}]   ;;  %s1961_s11 = inlined_call_operand.vmem [shape: bf16[128,128], index: 11, kind: input, shape index: {}]   ;;  %s1962_s8 = inlined_call_operand.vmem [shape: f32[1,128], index: 8, kind: input, shape index: {}]   ;;  %s1963_s18 = inlined_call_operand.vmem [shape: f32[16,128], index: 18, kind: output, shape index: {1}]   ;;  %s1964_s13 = inlined_call_operand.vmem [shape: bf16[128,128], index: 13, kind: input, shape index: {}]   ;;  %s1965_s10 = inlined_call_operand.vmem [shape: f32[1,128], index: 10, kind: input, shape index: {}]   ;;  %s1966_s15 = inlined_call_operand.vmem [shape: bf16[128,256], index: 15, kind: input, shape index: {}]   ;;  %s1967_s12 = inlined_call_operand.vmem [shape: f32[1,128], index: 12, kind: input, shape index: {}]   ;;  %s1968_s14 = inlined_call_operand.vmem [shape: f32[1,128], index: 14, kind: input, shape index: {}]   ;;  %s1969_s16 = inlined_call_operand.vmem [shape: f32[1,256], index: 16, kind: input, shape index: {}]   ;;  %s1970_s17 = inlined_call_operand.vmem [shape: f32[16,256], index: 17, kind: output, shape index: {0}]  }
   0x1   :  { %1974 = sst [smem:[#allocation2_spill]] %s1952_s1  ;;  %1292 = vmatprep.subr.bf16.mxu1 %v1506_v1  ;;  %1308 = vmatprep.mubr.msk.bf16.mxu1 %vm1507_vm0, %v1506_v1  ;;  %v1442_v27 = vld [vmem:[%s1955_s5] sm:$0xff]   ;;  %v1443_v28 = vld [vmem:[%s1955_s5 + $0x8] sm:$0xff]   ;;  %v1444_v29 = vld [vmem:[%s1955_s5 + $0x10] sm:$0xff]  }
   0x2   :  { %1975 = sst [smem:[#allocation3_spill]] %s1953_s0  ;;  %s1977_s29 = sld [smem:[#allocation2_spill]]  ;;  %v1445_v30 = vld [vmem:[%s1955_s5 + $0x18] sm:$0xff]   ;;  %v1446_v31 = vld [vmem:[%s1955_s5 + $0x20] sm:$0xff]   ;;  %v1447_v32 = vld [vmem:[%s1955_s5 + $0x28] sm:$0xff]  }
   0x3   :  { %1976 = sst [smem:[#allocation4_spill]] %s1954_s3  ;;  %s1978_s25 = sld [smem:[#allocation3_spill]]  ;;  %v1127_v34 = vld [vmem:[%s1956_s2] ss:$0 sm:$0xff]  ;;  %v1448_v47 = vld [vmem:[%s1955_s5 + $0x30] sm:$0xff]   ;;  %v1449_v48 = vld [vmem:[%s1955_s5 + $0x38] sm:$0xff]  }
   0x4   :  { %s1979_s28 = sld [smem:[#allocation4_spill]]  ;;  %v1450_v49 = vld [vmem:[%s1957_s7] sm:$0xff]   ;;  %v1451_v50 = vld [vmem:[%s1957_s7 + $0x8] sm:$0xff]   ;;  %v1452_v51 = vld [vmem:[%s1957_s7 + $0x10] sm:$0xff]  }
   0x5   :  { %v1453_v52 = vld [vmem:[%s1957_s7 + $0x18] sm:$0xff]   ;;  %v1454_v53 = vld [vmem:[%s1957_s7 + $0x20] sm:$0xff]   ;;  %v1455_v54 = vld [vmem:[%s1957_s7 + $0x28] sm:$0xff]  }
   0x6   :  { %v1146_v55 = vld [vmem:[%s1958_s4] ss:$0 sm:$0xff] }
   0x8   :  { %v1415_v0 = vld [vmem:[%s1977_s29 + $0x40] sm:$0xff]   ;;  %v1417_v3 = vld [vmem:[%s1977_s29 + $0x48] sm:$0xff]   ;;  %v1419_v5 = vld [vmem:[%s1977_s29 + $0x50] sm:$0xff]  }
   0x9   :  { %v1416_v2 = vld [vmem:[%s1977_s29] sm:$0xff]   ;;  %1216 = vmatprep.subr.bf16.mxu0 %v1415_v0  ;;  %v1418_v4 = vld [vmem:[%s1977_s29 + $0x8] sm:$0xff]   ;;  %v1420_v6 = vld [vmem:[%s1977_s29 + $0x10] sm:$0xff]  }
   0xa   :  { %1217 = vmatpush3.bf16.msra.mxu0 %v1416_v2  ;;  %v1421_v7 = vld [vmem:[%s1977_s29 + $0x58] sm:$0xff]   ;;  %v1423_v9 = vld [vmem:[%s1977_s29 + $0x60] sm:$0xff]   ;;  %v1425_v11 = vld [vmem:[%s1977_s29 + $0x68] sm:$0xff]  }
   0xb   :  { %1218 = vmatprep.subr.bf16.mxu0 %v1417_v3  ;;  %v1422_v8 = vld [vmem:[%s1977_s29 + $0x18] sm:$0xff]   ;;  %v1424_v10 = vld [vmem:[%s1977_s29 + $0x20] sm:$0xff]   ;;  %v1426_v12 = vld [vmem:[%s1977_s29 + $0x28] sm:$0xff]  }
   0xc   :  { %v1433_v13 = vld [vmem:[%s1978_s25 + $0x4] ss:$8 sps:$4 sm:$0xff]   ;;  %v1427_v15 = vld [vmem:[%s1977_s29 + $0x70] sm:$0xff]   ;;  %v1429_v18 = vld [vmem:[%s1977_s29 + $0x78] sm:$0xff]  }
   0xd   :  { %v1434_v14 = vld [vmem:[%s1979_s28] sm:$0xff]   ;;  %238 = vmatprep.mubr.bf16.mxu0 %v1433_v13  ;;  %v1435_v16 = vld [vmem:[%s1979_s28 + $0x8] sm:$0xff]   ;;  %v1428_v17 = vld [vmem:[%s1977_s29 + $0x30] sm:$0xff]  }
   0xe   :  { %1219 = vmatpush3.bf16.msra.mxu0 %v1418_v4  ;;  %1293 = vmatpush3.bf16.msra.mxu1 %v1434_v14  ;;  %v1436_v19 = vld [vmem:[%s1979_s28 + $0x10] sm:$0xff]   ;;  %v1430_v20 = vld [vmem:[%s1977_s29 + $0x38] sm:$0xff]   ;;  %v1431_v22 = vld [vmem:[%s1978_s25] ss:$8 sps:$4 sm:$0xff]  }
   0xf   :  { %1220 = vmatprep.subr.bf16.mxu0 %v1419_v5  ;;  %1294 = vmatprep.subr.bf16.mxu1 %v1506_v1  ;;  %v1437_v21 = vld [vmem:[%s1979_s28 + $0x18] sm:$0xff]   ;;  %v1438_v23 = vld [vmem:[%s1979_s28 + $0x20] sm:$0xff]   ;;  %v1439_v24 = vld [vmem:[%s1979_s28 + $0x28] sm:$0xff]  }
  0x10   :  { %v1440_v25 = vld [vmem:[%s1979_s28 + $0x30] sm:$0xff]   ;;  %v1441_v26 = vld [vmem:[%s1979_s28 + $0x38] sm:$0xff]  }
  0x11   :  { %v1456_v4 = vld [vmem:[%s1957_s7 + $0x30] sm:$0xff]   ;;  %v1457_v5 = vld [vmem:[%s1957_s7 + $0x38] sm:$0xff]  }
  0x12   :  { %1221 = vmatpush3.bf16.msra.mxu0 %v1420_v6  ;;  %1295 = vmatpush3.bf16.msra.mxu1 %v1435_v16  ;;  %v1458_v6 = vld [vmem:[%s1959_s9] sm:$0xff]  }
  0x13   :  { %1222 = vmatprep.subr.bf16.mxu0 %v1421_v7  ;;  %1296 = vmatprep.subr.bf16.mxu1 %v1506_v1  ;;  %v1459_v7 = vld [vmem:[%s1959_s9 + $0x8] sm:$0xff]  }
  0x16   :  { %1223 = vmatpush3.bf16.msra.mxu0 %v1422_v8  ;;  %1297 = vmatpush3.bf16.msra.mxu1 %v1436_v19  ;;  %v1460_v8 = vld [vmem:[%s1959_s9 + $0x10] sm:$0xff]  }
  0x17   :  { %1224 = vmatprep.subr.bf16.mxu0 %v1423_v9  ;;  %1298 = vmatprep.subr.bf16.mxu1 %v1506_v1  ;;  %v1461_v9 = vld [vmem:[%s1959_s9 + $0x18] sm:$0xff]  }
  0x1a   :  { %1225 = vmatpush3.bf16.msra.mxu0 %v1424_v10  ;;  %1299 = vmatpush3.bf16.msra.mxu1 %v1437_v21  ;;  %v1462_v10 = vld [vmem:[%s1959_s9 + $0x20] sm:$0xff]  }
  0x1b   :  { %1226 = vmatprep.subr.bf16.mxu0 %v1425_v11  ;;  %1300 = vmatprep.subr.bf16.mxu1 %v1506_v1  ;;  %v1463_v11 = vld [vmem:[%s1959_s9 + $0x28] sm:$0xff]  }
  0x1e   :  { %1227 = vmatpush3.bf16.msra.mxu0 %v1426_v12  ;;  %1301 = vmatpush3.bf16.msra.mxu1 %v1438_v23  ;;  %v1155_v12 = vld [vmem:[%s1960_s6] ss:$0 sm:$0xff] }
  0x1f   :  { %1228 = vmatprep.subr.bf16.mxu0 %v1427_v15  ;;  %1302 = vmatprep.subr.bf16.mxu1 %v1506_v1 }
  0x22   :  { %1229 = vmatpush3.bf16.msra.mxu0 %v1428_v17  ;;  %1303 = vmatpush3.bf16.msra.mxu1 %v1439_v24  ;;  %v1464_v24 = vld [vmem:[%s1959_s9 + $0x30] sm:$0xff]  }
  0x23   :  { %1230 = vmatprep.subr.bf16.mxu0 %v1429_v18  ;;  %1304 = vmatprep.subr.bf16.mxu1 %v1506_v1 }
  0x26   :  { %1231 = vmatpush3.bf16.msra.mxu0 %v1430_v20  ;;  %1305 = vmatpush3.bf16.msra.mxu1 %v1440_v25  ;;  %v1465_v25 = vld [vmem:[%s1959_s9 + $0x38] sm:$0xff]  }
  0x27   :  { %1312 = vmatprep.subr.bf16.mxu0 %v1506_v1  ;;  %1306 = vmatprep.subr.bf16.mxu1 %v1506_v1 }
  0x29   :  { %239 = vmatmul.mubr.bf16.vlgmr.msra.gmra.mrb[0].mxu0 %v1431_v22 }
  0x2a   :  { %1328 = vmatprep.mubr.msk.bf16.mxu0 %vm1507_vm0, %v1506_v1  ;;  %1307 = vmatpush3.bf16.msra.mxu1 %v1441_v26  ;;  %v1466_v26 = vld [vmem:[%s1961_s11] sm:$0xff]  }
  0x2b   :  { %1332 = vmatprep.subr.bf16.mxu1 %v1506_v1  ;;  %1313 = vmatpush3.bf16.msra.mxu0 %v1442_v27  ;;  %v1467_v27 = vld [vmem:[%s1961_s11 + $0x8] sm:$0xff]  }
  0x2c   :  { %1314 = vmatprep.subr.bf16.mxu0 %v1506_v1 }
  0x2f   :  { %1315 = vmatpush3.bf16.msra.mxu0 %v1443_v28  ;;  %v1468_v28 = vld [vmem:[%s1961_s11 + $0x10] sm:$0xff]  }
  0x30   :  { %1316 = vmatprep.subr.bf16.mxu0 %v1506_v1 }
  0x33   :  { %1317 = vmatpush3.bf16.msra.mxu0 %v1444_v29  ;;  %v1469_v29 = vld [vmem:[%s1961_s11 + $0x18] sm:$0xff]  }
  0x34   :  { %1318 = vmatprep.subr.bf16.mxu0 %v1506_v1 }
  0x37   :  { %1319 = vmatpush3.bf16.msra.mxu0 %v1445_v30  ;;  %v1470_v30 = vld [vmem:[%s1961_s11 + $0x20] sm:$0xff]  }
  0x38   :  { %1320 = vmatprep.subr.bf16.mxu0 %v1506_v1 }
  0x3b   :  { %1321 = vmatpush3.bf16.msra.mxu0 %v1446_v31  ;;  %v1471_v31 = vld [vmem:[%s1961_s11 + $0x28] sm:$0xff]  }
  0x3c   :  { %1322 = vmatprep.subr.bf16.mxu0 %v1506_v1 }
  0x3f   :  { %1323 = vmatpush3.bf16.msra.mxu0 %v1447_v32  ;;  %v1164_v32 = vld [vmem:[%s1962_s8] ss:$0 sm:$0xff] }
  0x40   :  { %1324 = vmatprep.subr.bf16.mxu0 %v1506_v1 }
  0x43   :  { %1325 = vmatpush3.bf16.msra.mxu0 %v1448_v47  ;;  %v1479_v47 = vld [vmem:[%s1964_s13 + $0x28] sm:$0xff]  }
  0x44   :  { %1326 = vmatprep.subr.bf16.mxu0 %v1506_v1 }
  0x47   :  { %1327 = vmatpush3.bf16.msra.mxu0 %v1449_v48  ;;  %v1173_v48 = vld [vmem:[%s1965_s10] ss:$0 sm:$0xff] }
  0x48   :  { %1352 = vmatprep.subr.bf16.mxu0 %v1506_v1 }
  0xfc   :  { %v1232_v33 = vpop.f32.mrb[0].mxu0 }
  0xfd   :  { %v1233_v35 = vpop.f32.mrb[1].mxu0 }
  0xfe   :  { %v1234_v36 = vadd.f32 %v1233_v35, %v1232_v33  ;;  %v1235_v37 = vpop.f32.mrb[2].mxu0 }
  0xff   :  { %v1236_v38 = vpop.f32.mrb[3].mxu0 }
 0x100   :  { %v241_v39 = vadd.f32 %v1234_v36, %v1127_v34  ;;  %v1237_v40 = vadd.f32 %v1236_v38, %v1235_v37 }
 0x102   :  { %v249_v41 = vmul.f32 0.2, %v241_v39  ;;  %v244_v42 = vadd.f32 %v1237_v40, %v1127_v34  ;;  %vm247_vm1 = vcmp.gt.f32.partialorder %v241_v39, 0.0  ;;  %v1472_v40 = vld [vmem:[%s1961_s11 + $0x30] sm:$0xff]  }
 0x104   :  { %vm248_vm2 = vcmp.gt.f32.partialorder %v244_v42, 0.0  ;;  %v250_v43 = vmul.f32 0.2, %v244_v42  ;;  %v251_v44 = vsel %vm247_vm1, %v241_v39, %v249_v41  ;;  %v1473_v41 = vld [vmem:[%s1961_s11 + $0x38] sm:$0xff]  }
 0x106   :  { %v252_v45 = vsel %vm248_vm2, %v244_v42, %v250_v43  ;;  %v1474_v42 = vld [vmem:[%s1964_s13] sm:$0xff]   ;;  %v1475_v43 = vld [vmem:[%s1964_s13 + $0x8] sm:$0xff]  }
 0x107   :  { %v253_v46 = vpack.c.bf16 %v252_v45, %v251_v44  ;;  %v1476_v44 = vld [vmem:[%s1964_s13 + $0x10] sm:$0xff]   ;;  %v1477_v45 = vld [vmem:[%s1964_s13 + $0x18] sm:$0xff]  }
 0x109   :  { %1309 = vmatmul.mubr.bf16.vlgmr.msra.gmra.mrb[0].mxu1 %v253_v46  ;;  %v1478_v46 = vld [vmem:[%s1964_s13 + $0x20] sm:$0xff]  }
 0x10a   :  { %1348 = vmatprep.mubr.msk.bf16.mxu1 %vm1507_vm0, %v1506_v1  ;;  %1333 = vmatpush3.bf16.msra.mxu1 %v1450_v49 }
 0x10b   :  { %1334 = vmatprep.subr.bf16.mxu1 %v1506_v1 }
 0x10e   :  { %1335 = vmatpush3.bf16.msra.mxu1 %v1451_v50 }
 0x10f   :  { %1336 = vmatprep.subr.bf16.mxu1 %v1506_v1 }
 0x112   :  { %1337 = vmatpush3.bf16.msra.mxu1 %v1452_v51 }
 0x113   :  { %1338 = vmatprep.subr.bf16.mxu1 %v1506_v1 }
 0x116   :  { %1339 = vmatpush3.bf16.msra.mxu1 %v1453_v52 }
 0x117   :  { %1340 = vmatprep.subr.bf16.mxu1 %v1506_v1 }
 0x11a   :  { %1341 = vmatpush3.bf16.msra.mxu1 %v1454_v53 }
 0x11b   :  { %1342 = vmatprep.subr.bf16.mxu1 %v1506_v1 }
 0x11e   :  { %1343 = vmatpush3.bf16.msra.mxu1 %v1455_v54 }
 0x11f   :  { %1344 = vmatprep.subr.bf16.mxu1 %v1506_v1 }
 0x122   :  { %1345 = vmatpush3.bf16.msra.mxu1 %v1456_v4  ;;  %v1493_v4 = vld [vmem:[%s1966_s15 + $0x34] ss:$8 sps:$4 sm:$0xff]  }
 0x123   :  { %1346 = vmatprep.subr.bf16.mxu1 %v1506_v1 }
 0x126   :  { %1347 = vmatpush3.bf16.msra.mxu1 %v1457_v5  ;;  %v1491_v5 = vld [vmem:[%s1966_s15 + $0x30] ss:$8 sps:$4 sm:$0xff]  }
 0x127   :  { %1372 = vmatprep.subr.bf16.mxu1 %v1506_v1 }
 0x1dc   :  { %v359_v56 = vpop.f32.mrb[0].mxu1 }
 0x1dd   :  { %v360_v57 = vadd.f32 %v1146_v55, %v359_v56  ;;  %v1310_v58 = vpop.f32.mrb[1].mxu1 }
 0x1de   :  { %v362_v59 = vpop.f32.mrb[2].mxu1 }
 0x1df   :  { %v368_v60 = vmul.f32 0.2, %v360_v57  ;;  %v363_v61 = vadd.f32 %v1146_v55, %v362_v59  ;;  %v1311_v62 = vpop.f32.mrb[3].mxu1  ;;  %vm366_vm3 = vcmp.gt.f32.partialorder %v360_v57, 0.0 }
 0x1e0   :  { %v1482_v62 = vld [vmem:[%s1966_s15] ss:$8 sps:$4 sm:$0xff]  }
 0x1e1   :  { %vm367_vm4 = vcmp.gt.f32.partialorder %v363_v61, 0.0  ;;  %v369_v63 = vmul.f32 0.2, %v363_v61  ;;  %v370_v0 = vsel %vm366_vm3, %v360_v57, %v368_v60  ;;  %v1480_v60 = vld [vmem:[%s1964_s13 + $0x30] sm:$0xff]  }
 0x1e3   :  { %v371_v2 = vsel %vm367_vm4, %v363_v61, %v369_v63  ;;  %v1481_v61 = vld [vmem:[%s1964_s13 + $0x38] sm:$0xff]   ;;  %v1484_v63 = vld [vmem:[%s1966_s15 + $0x4] ss:$8 sps:$4 sm:$0xff]  }
 0x1e4   :  { %v372_v3 = vpack.c.bf16 %v371_v2, %v370_v0  ;;  %v1487_v0 = vld [vmem:[%s1966_s15 + $0x14] ss:$8 sps:$4 sm:$0xff]   ;;  %v1490_v2 = vld [vmem:[%s1966_s15 + $0x24] ss:$8 sps:$4 sm:$0xff]  }
 0x1e6   :  { %1329 = vmatmul.mubr.bf16.vlgmr.msra.gmra.mrb[4].mxu0 %v372_v3  ;;  %v1488_v3 = vld [vmem:[%s1966_s15 + $0x20] ss:$8 sps:$4 sm:$0xff]  }
 0x1e7   :  { %1368 = vmatprep.mubr.msk.bf16.mxu0 %vm1507_vm0, %v1506_v1  ;;  %1353 = vmatpush3.bf16.msra.mxu0 %v1458_v6  ;;  %v1496_v6 = vld [vmem:[%s1966_s15 + $0x44] ss:$8 sps:$4 sm:$0xff]  }
 0x1e8   :  { %1354 = vmatprep.subr.bf16.mxu0 %v1506_v1 }
 0x1eb   :  { %1355 = vmatpush3.bf16.msra.mxu0 %v1459_v7  ;;  %v1494_v7 = vld [vmem:[%s1966_s15 + $0x40] ss:$8 sps:$4 sm:$0xff]  }
 0x1ec   :  { %1356 = vmatprep.subr.bf16.mxu0 %v1506_v1 }
 0x1ef   :  { %1357 = vmatpush3.bf16.msra.mxu0 %v1460_v8  ;;  %v1499_v8 = vld [vmem:[%s1966_s15 + $0x54] ss:$8 sps:$4 sm:$0xff]  }
 0x1f0   :  { %1358 = vmatprep.subr.bf16.mxu0 %v1506_v1 }
 0x1f3   :  { %1359 = vmatpush3.bf16.msra.mxu0 %v1461_v9  ;;  %v1497_v9 = vld [vmem:[%s1966_s15 + $0x50] ss:$8 sps:$4 sm:$0xff]  }
 0x1f4   :  { %1360 = vmatprep.subr.bf16.mxu0 %v1506_v1 }
 0x1f7   :  { %1361 = vmatpush3.bf16.msra.mxu0 %v1462_v10  ;;  %v1182_v10 = vld [vmem:[%s1967_s12] ss:$0 sm:$0xff] }
 0x1f8   :  { %1362 = vmatprep.subr.bf16.mxu0 %v1506_v1 }
 0x1fb   :  { %1363 = vmatpush3.bf16.msra.mxu0 %v1463_v11 }
 0x1fc   :  { %1364 = vmatprep.subr.bf16.mxu0 %v1506_v1 }
 0x1ff   :  { %1365 = vmatpush3.bf16.msra.mxu0 %v1464_v24  ;;  %v1505_v24 = vld [vmem:[%s1966_s15 + $0x74] ss:$8 sps:$4 sm:$0xff]  }
 0x200   :  { %1366 = vmatprep.subr.bf16.mxu0 %v1506_v1 }
 0x203   :  { %1367 = vmatpush3.bf16.msra.mxu0 %v1465_v25  ;;  %v1503_v25 = vld [vmem:[%s1966_s15 + $0x70] ss:$8 sps:$4 sm:$0xff]  }
 0x204   :  { %1392 = vmatprep.subr.bf16.mxu0 %v1506_v1 }
 0x2b9   :  { %v478_v13 = vpop.f32.mrb[4].mxu0 }
 0x2ba   :  { %v479_v14 = vadd.f32 %v1155_v12, %v478_v13  ;;  %v1330_v15 = vpop.f32.mrb[5].mxu0 }
 0x2bb   :  { %v481_v16 = vpop.f32.mrb[6].mxu0 }
 0x2bc   :  { %v487_v17 = vmul.f32 0.2, %v479_v14  ;;  %v482_v18 = vadd.f32 %v1155_v12, %v481_v16  ;;  %v1331_v19 = vpop.f32.mrb[7].mxu0  ;;  %vm485_vm5 = vcmp.gt.f32.partialorder %v479_v14, 0.0 }
 0x2be   :  { %vm486_vm6 = vcmp.gt.f32.partialorder %v482_v18, 0.0  ;;  %v488_v20 = vmul.f32 0.2, %v482_v18  ;;  %v489_v21 = vsel %vm485_vm5, %v479_v14, %v487_v17 }
 0x2c0   :  { %v490_v22 = vsel %vm486_vm6, %v482_v18, %v488_v20 }
 0x2c1   :  { %v491_v23 = vpack.c.bf16 %v490_v22, %v489_v21  ;;  %v1502_v22 = vld [vmem:[%s1966_s15 + $0x64] ss:$8 sps:$4 sm:$0xff]  }
 0x2c3   :  { %1349 = vmatmul.mubr.bf16.vlgmr.msra.gmra.mrb[4].mxu1 %v491_v23  ;;  %v1500_v23 = vld [vmem:[%s1966_s15 + $0x60] ss:$8 sps:$4 sm:$0xff]  }
 0x2c4   :  { %1388 = vmatprep.mubr.msk.bf16.mxu1 %vm1507_vm0, %v1506_v1  ;;  %1373 = vmatpush3.bf16.msra.mxu1 %v1466_v26  ;;  %v1508_v26 = vmov 0  }
 0x2c5   :  { %1374 = vmatprep.subr.bf16.mxu1 %v1506_v1 }
 0x2c8   :  { %1375 = vmatpush3.bf16.msra.mxu1 %v1467_v27  ;;  %v1191_v27 = vld [vmem:[%s1968_s14] ss:$0 sm:$0xff] }
 0x2c9   :  { %1376 = vmatprep.subr.bf16.mxu1 %v1506_v1 }
 0x2cc   :  { %1377 = vmatpush3.bf16.msra.mxu1 %v1468_v28 }
 0x2cd   :  { %1378 = vmatprep.subr.bf16.mxu1 %v1506_v1 }
 0x2d0   :  { %1379 = vmatpush3.bf16.msra.mxu1 %v1469_v29 }
 0x2d1   :  { %1380 = vmatprep.subr.bf16.mxu1 %v1506_v1 }
 0x2d4   :  { %1381 = vmatpush3.bf16.msra.mxu1 %v1470_v30 }
 0x2d5   :  { %1382 = vmatprep.subr.bf16.mxu1 %v1506_v1 }
 0x2d8   :  { %1383 = vmatpush3.bf16.msra.mxu1 %v1471_v31 }
 0x2d9   :  { %1384 = vmatprep.subr.bf16.mxu1 %v1506_v1 }
 0x2dc   :  { %1385 = vmatpush3.bf16.msra.mxu1 %v1472_v40 }
 0x2dd   :  { %1386 = vmatprep.subr.bf16.mxu1 %v1506_v1 }
 0x2e0   :  { %1387 = vmatpush3.bf16.msra.mxu1 %v1473_v41 }
 0x2e1   :  { %1072 = vmatprep.subr.bf16.mxu1 %v1484_v63 }
 0x396   :  { %v597_v33 = vpop.f32.mrb[4].mxu1 }
 0x397   :  { %v598_v34 = vadd.f32 %v1164_v32, %v597_v33  ;;  %v1350_v35 = vpop.f32.mrb[5].mxu1 }
 0x398   :  { %v600_v36 = vpop.f32.mrb[6].mxu1 }
 0x399   :  { %604 = vst [vmem:[%s1963_s18] sm:$0xff] %v598_v34  ;;  %v601_v37 = vadd.f32 %v1164_v32, %v600_v36  ;;  %v1351_v38 = vpop.f32.mrb[7].mxu1 }
 0x39b   :  { %605 = vst [vmem:[%s1963_s18 + $0x8] sm:$0xff] %v601_v37  ;;  %v606_v39 = vpack.c.bf16 %v601_v37, %v598_v34 }
 0x39d   :  { %1369 = vmatmul.mubr.bf16.vlgmr.msra.gmra.mrb[8].mxu0 %v606_v39  ;;  %v982_v39 = vlaneseq }
 0x39e   :  { %1408 = vmatprep.mubr.msk.bf16.mxu0 %vm1507_vm0, %v1506_v1  ;;  %1393 = vmatpush3.bf16.msra.mxu0 %v1474_v42  ;;  %v980_v42 = vld [vmem:[%s1969_s16] sm:$0x3] }
 0x39f   :  { %1394 = vmatprep.subr.bf16.mxu0 %v1506_v1  ;;  %v983_v40 = vshrl.u32 %v982_v39, 7 }
 0x3a1   :  { %v984_v41 = vsub.s32 0, %v983_v40 }
 0x3a2   :  { %1395 = vmatpush3.bf16.msra.mxu0 %v1475_v43  ;;  %v988_v43 = vsub.s32 1, %v983_v40 }
 0x3a3   :  { %1396 = vmatprep.subr.bf16.mxu0 %v1506_v1 }
 0x3a6   :  { %1397 = vmatpush3.bf16.msra.mxu0 %v1476_v44  ;;  %v985_v44 = vrot.slane %v980_v42, %v984_v41 }
 0x3a7   :  { %1398 = vmatprep.subr.bf16.mxu0 %v1506_v1 }
 0x3aa   :  { %1399 = vmatpush3.bf16.msra.mxu0 %v1477_v45  ;;  %v989_v45 = vrot.slane %v980_v42, %v988_v43 }
 0x3ab   :  { %1400 = vmatprep.subr.bf16.mxu0 %v1506_v1 }
 0x3ae   :  { %1401 = vmatpush3.bf16.msra.mxu0 %v1478_v46 }
 0x3af   :  { %1402 = vmatprep.subr.bf16.mxu0 %v1506_v1 }
 0x3b2   :  { %1403 = vmatpush3.bf16.msra.mxu0 %v1479_v47 }
 0x3b3   :  { %1404 = vmatprep.subr.bf16.mxu0 %v1506_v1 }
 0x3b6   :  { %1405 = vmatpush3.bf16.msra.mxu0 %v1480_v60 }
 0x3b7   :  { %1406 = vmatprep.subr.bf16.mxu0 %v1506_v1  ;;  %v1485_v1 = vld [vmem:[%s1966_s15 + $0x10] ss:$8 sps:$4 sm:$0xff]  }
 0x3ba   :  { %1407 = vmatpush3.bf16.msra.mxu0 %v1481_v61 }
 0x470   :  { %v712_v49 = vpop.f32.mrb[8].mxu0 }
 0x471   :  { %v713_v50 = vadd.f32 %v1173_v48, %v712_v49  ;;  %v1370_v51 = vpop.f32.mrb[9].mxu0 }
 0x472   :  { %v715_v52 = vpop.f32.mrb[10].mxu0 }
 0x473   :  { %v721_v53 = vmul.f32 0.2, %v713_v50  ;;  %v716_v54 = vadd.f32 %v1173_v48, %v715_v52  ;;  %v1371_v55 = vpop.f32.mrb[11].mxu0  ;;  %vm719_vm7 = vcmp.gt.f32.partialorder %v713_v50, 0.0 }
 0x475   :  { %vm720_vm8 = vcmp.gt.f32.partialorder %v716_v54, 0.0  ;;  %v722_v56 = vmul.f32 0.2, %v716_v54  ;;  %v723_v57 = vsel %vm719_vm7, %v713_v50, %v721_v53 }
 0x477   :  { %v724_v58 = vsel %vm720_vm8, %v716_v54, %v722_v56 }
 0x478   :  { %v725_v59 = vpack.c.bf16 %v724_v58, %v723_v57 }
 0x47a   :  { %1389 = vmatmul.mubr.bf16.vlgmr.msra.gmra.mrb[8].mxu1 %v725_v59 }
 0x47b   :  { %1073 = vmatpush1.bf16.msra.mxu1 %v1482_v62  ;;  %1104 = vmatprep.mubr.bf16.mxu1 %v1508_v26 }
 0x47c   :  { %1074 = vmatprep.subr.bf16.mxu1 %v1487_v0 }
 0x47f   :  { %1075 = vmatpush1.bf16.msra.mxu1 %v1485_v1 }
 0x480   :  { %1076 = vmatprep.subr.bf16.mxu1 %v1490_v2 }
 0x483   :  { %1077 = vmatpush1.bf16.msra.mxu1 %v1488_v3 }
 0x484   :  { %1078 = vmatprep.subr.bf16.mxu1 %v1493_v4 }
 0x487   :  { %1079 = vmatpush1.bf16.msra.mxu1 %v1491_v5 }
 0x488   :  { %1080 = vmatprep.subr.bf16.mxu1 %v1496_v6 }
 0x48b   :  { %1081 = vmatpush1.bf16.msra.mxu1 %v1494_v7 }
 0x48c   :  { %1082 = vmatprep.subr.bf16.mxu1 %v1499_v8 }
 0x48f   :  { %1083 = vmatpush1.bf16.msra.mxu1 %v1497_v9 }
 0x490   :  { %1084 = vmatprep.subr.bf16.mxu1 %v1502_v22 }
 0x493   :  { %1085 = vmatpush1.bf16.msra.mxu1 %v1500_v23 }
 0x494   :  { %1086 = vmatprep.subr.bf16.mxu1 %v1505_v24 }
 0x497   :  { %1087 = vmatpush1.bf16.msra.mxu1 %v1503_v25 }
 0x54d   :  { %v831_v11 = vpop.f32.mrb[8].mxu1 }
 0x54e   :  { %v832_v12 = vadd.f32 %v1182_v10, %v831_v11  ;;  %v1390_v13 = vpop.f32.mrb[9].mxu1 }
 0x54f   :  { %v834_v14 = vpop.f32.mrb[10].mxu1 }
 0x550   :  { %v840_v15 = vmul.f32 0.2, %v832_v12  ;;  %v835_v16 = vadd.f32 %v1182_v10, %v834_v14  ;;  %v1391_v17 = vpop.f32.mrb[11].mxu1  ;;  %vm838_vm9 = vcmp.gt.f32.partialorder %v832_v12, 0.0 }
 0x552   :  { %vm839_vm10 = vcmp.gt.f32.partialorder %v835_v16, 0.0  ;;  %v841_v18 = vmul.f32 0.2, %v835_v16  ;;  %v842_v19 = vsel %vm838_vm9, %v832_v12, %v840_v15 }
 0x554   :  { %v843_v20 = vsel %vm839_vm10, %v835_v16, %v841_v18 }
 0x555   :  { %v844_v21 = vpack.c.bf16 %v843_v20, %v842_v19 }
 0x557   :  { %1409 = vmatmul.mubr.bf16.vlgmr.msra.gmra.mrb[12].mxu0 %v844_v21 }
 0x62a   :  { %v950_v28 = vpop.f32.mrb[12].mxu0 }
 0x62b   :  { %v951_v29 = vadd.f32 %v1191_v27, %v950_v28  ;;  %v1410_v30 = vpop.f32.mrb[13].mxu0 }
 0x62c   :  { %v953_v31 = vpop.f32.mrb[14].mxu0 }
 0x62d   :  { %v959_v32 = vmul.f32 0.2, %v951_v29  ;;  %v954_v33 = vadd.f32 %v1191_v27, %v953_v31  ;;  %v1411_v34 = vpop.f32.mrb[15].mxu0  ;;  %vm957_vm11 = vcmp.gt.f32.partialorder %v951_v29, 0.0 }
 0x62f   :  { %vm958_vm12 = vcmp.gt.f32.partialorder %v954_v33, 0.0  ;;  %v960_v35 = vmul.f32 0.2, %v954_v33  ;;  %v961_v36 = vsel %vm957_vm11, %v951_v29, %v959_v32 }
 0x631   :  { %v962_v37 = vsel %vm958_vm12, %v954_v33, %v960_v35 }
 0x632   :  { %v963_v38 = vpack.c.bf16 %v962_v37, %v961_v36 }
 0x634   :  { %1105 = vmatmul.mubr.bf16.vlgmr.msra.gmra.mrb[12].mxu1 %v963_v38 }
 0x707   :  { %v1106_v46 = vpop.f32.mrb[12].mxu1 }
 0x708   :  { %v1107_v47 = vadd.f32 %v1106_v46, %v985_v44  ;;  %v1108_v48 = vpop.f32.mrb[13].mxu1 }
 0x709   :  { %v1109_v49 = vadd.f32 %v1108_v48, %v989_v45  ;;  %v1110_v50 = vpop.f32.mrb[14].mxu1 }
 0x70a   :  { %1115 = vst [vmem:[%s1970_s17] sm:$0xff] %v1107_v47  ;;  %v1111_v51 = vadd.f32 %v1110_v50, %v985_v44  ;;  %v1112_v52 = vpop.f32.mrb[15].mxu1 }
 0x70b   :  { %1116 = vst [vmem:[%s1970_s17 + $0x8] sm:$0xff] %v1109_v49  ;;  %v1113_v53 = vadd.f32 %v1112_v52, %v989_v45 }
 0x70c   :  { %1117 = vst [vmem:[%s1970_s17 + $0x10] sm:$0xff] %v1111_v51 }
 0x70d   :  { %1118 = vst [vmem:[%s1970_s17 + $0x18] sm:$0xff] %v1113_v53 }

</bundles_post_ra>
